<compile_context>
chip_gen: v7x
topology: tpu7x:2x2x1
jax: 0.10.0
libtpu: 0.0.40
codegen_flags: <defaults>
</compile_context>

<pallas_src>
import functools

import jax
import jax.numpy as jnp
from jax.experimental import pallas as pl
from jax.experimental.pallas import tpu as pltpu


# ---------------------------------------------------------------------------
# Kernel A: both conv branches, one sample per grid step.
# ---------------------------------------------------------------------------
def _conv_kernel(xn_ref, xe_ref,
                 w1n_ref, b1n_ref, w2n_ref, b2n_ref,
                 w1e_ref, b1e_ref, w2e_ref, b2e_ref,
                 p1n_ref, p2n_ref, p1e_ref, p2e_ref,
                 outn_ref, oute_ref, *, nhid, l_node, l_edge):
    f32 = jnp.float32

    def shift_stack(x, L):
        # x: (R, L) -> (3R, L); row blocks hold x[l-1], x[l], x[l+1] (zero-padded).
        R = x.shape[0]
        z = jnp.zeros((R, 1), f32)
        xp = jnp.concatenate([z, x, z], axis=1)                       # (R, L+2)
        return jnp.concatenate(
            [xp[:, 0:L], xp[:, 1:L + 1], xp[:, 2:L + 2]], axis=0)     # (3R, L)

    def pool(h, P, half):
        # max_pool1d(kernel_size=2): one matmul against the even|odd selection
        # matrix, then max of the two lane halves.
        r = jnp.dot(h, P, preferred_element_type=f32)                 # (C, 2*half)
        return jnp.maximum(r[:, :half], r[:, half:2 * half])          # (C, half)

    def branch(x_row, w1, b1, w2s, b2, P1, P2, L):
        # conv1 (1 -> nhid), fused over the 3 taps into a single matmul.
        h1 = jnp.dot(w1, shift_stack(x_row, L), preferred_element_type=f32) + b1
        h1 = jnp.maximum(h1, 0.0)
        p1 = pool(h1, P1, L // 2)                                     # (nhid, L/2)
        # conv2 (nhid -> nhid), 3 taps fused into one (nhid, 3*nhid) matmul.
        h2 = jnp.dot(w2s, shift_stack(p1, L // 2), preferred_element_type=f32) + b2
        h2 = jnp.maximum(h2, 0.0)
        return pool(h2, P2, L // 4)                                   # (nhid, L/4)

    outn_ref[0] = branch(xn_ref[0], w1n_ref[...], b1n_ref[...], w2n_ref[...],
                         b2n_ref[...], p1n_ref[...], p2n_ref[...],
                         l_node).astype(outn_ref.dtype)
    oute_ref[0] = branch(xe_ref[0], w1e_ref[...], b1e_ref[...], w2e_ref[...],
                         b2e_ref[...], p1e_ref[...], p2e_ref[...],
                         l_edge).astype(oute_ref.dtype)


# ---------------------------------------------------------------------------
# Kernel B: fc1 + ReLU + (dropout as identity) + fc2 for the whole batch.
# ---------------------------------------------------------------------------
def _fc_kernel(f_ref, w1_ref, b1_ref, w2_ref, b2_ref, out_ref):
    f32 = jnp.float32
    y = jnp.dot(f_ref[...], w1_ref[...], preferred_element_type=f32) + b1_ref[...]
    y = jnp.maximum(y, 0.0)
    # TODO(synk): nn.Dropout(p=0.3) is treated as identity (inference / eval semantics).
    out_ref[...] = (jnp.dot(y, w2_ref[...], preferred_element_type=f32)
                    + b2_ref[...]).astype(out_ref.dtype)


def _pool_matrix(L):
    """(L, L) matrix: left half selects even positions, right half odd positions."""
    half = L // 2
    i = jnp.arange(L)[:, None]
    j = jnp.arange(half)[None, :]
    even = (i == 2 * j).astype(jnp.float32)
    odd = (i == 2 * j + 1).astype(jnp.float32)
    return jnp.concatenate([even, odd], axis=1)


def cnn_forward(x_nodes, x_edges, params, *, nhid, n_classes):
    B, l_node = x_nodes.shape
    _, l_edge = x_edges.shape
    assert l_node // 4 == 13 and l_edge // 4 == 19, "fc1 expects nhid*(13+19) features"

    f32 = jnp.float32
    # ---- parameter reshaping (plain-JAX glue, PyTorch-native shapes in `params`)
    w1n = params['c1n_w'][:, 0, :].astype(f32)                         # (nhid, 3)
    b1n = params['c1n_b'][:, None].astype(f32)                         # (nhid, 1)
    # stacked conv2 weight: [o, k*nhid + c] = w2[o, c, k]
    w2n = jnp.transpose(params['c2n_w'], (0, 2, 1)).reshape(nhid, 3 * nhid).astype(f32)
    b2n = params['c2n_b'][:, None].astype(f32)
    w1e = params['c1e_w'][:, 0, :].astype(f32)
    b1e = params['c1e_b'][:, None].astype(f32)
    w2e = jnp.transpose(params['c2e_w'], (0, 2, 1)).reshape(nhid, 3 * nhid).astype(f32)
    b2e = params['c2e_b'][:, None].astype(f32)

    # pooling selection matrices, built once in the wrapper (resident in VMEM)
    p1n = _pool_matrix(l_node)
    p2n = _pool_matrix(l_node // 2)
    p1e = _pool_matrix(l_edge)
    p2e = _pool_matrix(l_edge // 2)

    xn3 = x_nodes[:, None, :].astype(f32)                              # (B, 1, l_node)
    xe3 = x_edges[:, None, :].astype(f32)                              # (B, 1, l_edge)

    kernel = functools.partial(_conv_kernel, nhid=nhid, l_node=l_node, l_edge=l_edge)

    def full_spec(a):
        return pl.BlockSpec(a.shape, lambda b, _nd=a.ndim: (0,) * _nd)

    grid_spec = pltpu.PrefetchScalarGridSpec(
        num_scalar_prefetch=0,
        grid=(B,),
        in_specs=[
            pl.BlockSpec((1, 1, l_node), lambda b: (b, 0, 0)),
            pl.BlockSpec((1, 1, l_edge), lambda b: (b, 0, 0)),
            full_spec(w1n), full_spec(b1n), full_spec(w2n), full_spec(b2n),
            full_spec(w1e), full_spec(b1e), full_spec(w2e), full_spec(b2e),
            full_spec(p1n), full_spec(p2n), full_spec(p1e), full_spec(p2e),
        ],
        out_specs=[
            pl.BlockSpec((1, nhid, l_node // 4), lambda b: (b, 0, 0)),
            pl.BlockSpec((1, nhid, l_edge // 4), lambda b: (b, 0, 0)),
        ],
    )

    hn, he = pl.pallas_call(
        kernel,
        out_shape=(jax.ShapeDtypeStruct((B, nhid, l_node // 4), f32),
                   jax.ShapeDtypeStruct((B, nhid, l_edge // 4), f32)),
        grid_spec=grid_spec,
        compiler_params=pltpu.CompilerParams(dimension_semantics=("parallel",)),
    )(xn3, xe3, w1n, b1n, w2n, b2n, w1e, b1e, w2e, b2e, p1n, p2n, p1e, p2e)

    # Flatten (channel-major, matching torch .view(B, -1)) and concat node||edge.
    feats = jnp.concatenate([hn.reshape(B, nhid * (l_node // 4)),
                             he.reshape(B, nhid * (l_edge // 4))], axis=1)

    fc1wT = params['fc1_w'].T.astype(f32)                              # (nhid*32, nhid)
    fc1b = params['fc1_b'][None, :].astype(f32)                        # (1, nhid)
    fc2wT = params['fc2_w'].T.astype(f32)                              # (nhid, n_classes)
    fc2b = params['fc2_b'][None, :].astype(f32)                        # (1, n_classes)

    logits = pl.pallas_call(
        _fc_kernel,
        out_shape=jax.ShapeDtypeStruct((B, n_classes), f32),
    )(feats, fc1wT, fc1b, fc2wT, fc2b)
    return logits


def reference_forward(x_nodes, x_edges, params):
    """Pure-JAX reference mirroring the PyTorch forward (eval mode)."""
    def conv1d(x, w, b):                               # x (B,Cin,L), w (Cout,Cin,3)
        L = x.shape[-1]
        xp = jnp.pad(x, ((0, 0), (0, 0), (1, 1)))
        out = sum(jnp.einsum('oc,bcl->bol', w[:, :, k], xp[:, :, k:k + L]) for k in range(3))
        return out + b[None, :, None]

    def pool2(x):
        B, C, L = x.shape
        return x.reshape(B, C, L // 2, 2).max(axis=-1)

    def branch(x, w1, b1, w2, b2):
        h = x[:, None, :]
        h = pool2(jax.nn.relu(conv1d(h, w1, b1)))
        h = pool2(jax.nn.relu(conv1d(h, w2, b2)))
        return h.reshape(h.shape[0], -1)

    fn = branch(x_nodes, params['c1n_w'], params['c1n_b'], params['c2n_w'], params['c2n_b'])
    fe = branch(x_edges, params['c1e_w'], params['c1e_b'], params['c2e_w'], params['c2e_b'])
    f = jnp.concatenate([fn, fe], axis=1)
    y = jax.nn.relu(f @ params['fc1_w'].T + params['fc1_b'])
    return y @ params['fc2_w'].T + params['fc2_b']


if __name__ == "__main__":
    B = 2
    nhid = 32
    n_classes = 8
    nfeat_node = 52   # 52 -> 26 -> 13   (fc1 hardcodes nhid*(13+19))
    nfeat_edge = 76   # 76 -> 38 -> 19

    key = jax.random.PRNGKey(0)
    ks = jax.random.split(key, 16)

    def w(k, shape, scale=0.1):
        return (scale * jax.random.normal(k, shape)).astype(jnp.float32)

    params = {
        'c1n_w': w(ks[0], (nhid, 1, 3)),      'c1n_b': w(ks[1], (nhid,)),
        'c2n_w': w(ks[2], (nhid, nhid, 3)),   'c2n_b': w(ks[3], (nhid,)),
        'c1e_w': w(ks[4], (nhid, 1, 3)),      'c1e_b': w(ks[5], (nhid,)),
        'c2e_w': w(ks[6], (nhid, nhid, 3)),   'c2e_b': w(ks[7], (nhid,)),
        'fc1_w': w(ks[8], (nhid, nhid * (13 + 19))), 'fc1_b': w(ks[9], (nhid,)),
        'fc2_w': w(ks[10], (n_classes, nhid)),       'fc2_b': w(ks[11], (n_classes,)),
    }

    x_nodes = jax.random.normal(ks[12], (B, nfeat_node), dtype=jnp.float32)
    x_edges = jax.random.normal(ks[13], (B, nfeat_edge), dtype=jnp.float32)

    out = cnn_forward(x_nodes, x_edges, params, nhid=nhid, n_classes=n_classes)
    out = jax.block_until_ready(out)

    ref = reference_forward(x_nodes, x_edges, params)
    assert out.shape == (B, n_classes)
    assert jnp.allclose(out, ref, atol=1e-4, rtol=1e-4), (out, ref)
    print("KERNEL_OK")
</pallas_src>

<mosaic_0001>
module attributes {stable_mosaic.version = 11 : i64} {
  func.func @_conv_kernel(%arg0: i32, %arg1: memref<1x1x52xf32, #tpu.memory_space<vmem>>, %arg2: memref<1x1x76xf32, #tpu.memory_space<vmem>>, %arg3: memref<32x3xf32, #tpu.memory_space<vmem>>, %arg4: memref<32x1xf32, #tpu.memory_space<vmem>>, %arg5: memref<32x96xf32, #tpu.memory_space<vmem>>, %arg6: memref<32x1xf32, #tpu.memory_space<vmem>>, %arg7: memref<32x3xf32, #tpu.memory_space<vmem>>, %arg8: memref<32x1xf32, #tpu.memory_space<vmem>>, %arg9: memref<32x96xf32, #tpu.memory_space<vmem>>, %arg10: memref<32x1xf32, #tpu.memory_space<vmem>>, %arg11: memref<52x52xf32, #tpu.memory_space<vmem>>, %arg12: memref<26x26xf32, #tpu.memory_space<vmem>>, %arg13: memref<76x76xf32, #tpu.memory_space<vmem>>, %arg14: memref<38x38xf32, #tpu.memory_space<vmem>>, %arg15: memref<1x32x13xf32, #tpu.memory_space<vmem>>, %arg16: memref<1x32x19xf32, #tpu.memory_space<vmem>>) attributes {dimension_semantics = [#tpu.dimension_semantics<parallel>], iteration_bounds = array<i64: 2>, scalar_prefetch = 0 : i64, scratch_operands = 0 : i64, tpu.core_type = #tpu.core_type<tc>, window_params = [{transform_indices = @transform_0, window_bounds = array<i64: 1, 1, 52>}, {transform_indices = @transform_1, window_bounds = array<i64: 1, 1, 76>}, {pipeline_mode = #tpu.pipeline_mode<synchronous>, transform_indices = @transform_2, window_bounds = array<i64: 32, 3>}, {pipeline_mode = #tpu.pipeline_mode<synchronous>, transform_indices = @transform_3, window_bounds = array<i64: 32, 1>}, {pipeline_mode = #tpu.pipeline_mode<synchronous>, transform_indices = @transform_4, window_bounds = array<i64: 32, 96>}, {pipeline_mode = #tpu.pipeline_mode<synchronous>, transform_indices = @transform_5, window_bounds = array<i64: 32, 1>}, {pipeline_mode = #tpu.pipeline_mode<synchronous>, transform_indices = @transform_6, window_bounds = array<i64: 32, 3>}, {pipeline_mode = #tpu.pipeline_mode<synchronous>, transform_indices = @transform_7, window_bounds = array<i64: 32, 1>}, {pipeline_mode = #tpu.pipeline_mode<synchronous>, transform_indices = @transform_8, window_bounds = array<i64: 32, 96>}, {pipeline_mode = #tpu.pipeline_mode<synchronous>, transform_indices = @transform_9, window_bounds = array<i64: 32, 1>}, {pipeline_mode = #tpu.pipeline_mode<synchronous>, transform_indices = @transform_10, window_bounds = array<i64: 52, 52>}, {pipeline_mode = #tpu.pipeline_mode<synchronous>, transform_indices = @transform_11, window_bounds = array<i64: 26, 26>}, {pipeline_mode = #tpu.pipeline_mode<synchronous>, transform_indices = @transform_12, window_bounds = array<i64: 76, 76>}, {pipeline_mode = #tpu.pipeline_mode<synchronous>, transform_indices = @transform_13, window_bounds = array<i64: 38, 38>}, {transform_indices = @transform_14, window_bounds = array<i64: 1, 32, 13>}, {transform_indices = @transform_15, window_bounds = array<i64: 1, 32, 19>}]} {
    %c0 = arith.constant 0 : index
    %c0_0 = arith.constant 0 : index
    %c0_1 = arith.constant 0 : index
    %0 = vector.load %arg1[%c0, %c0_0, %c0_1] : memref<1x1x52xf32, #tpu.memory_space<vmem>>, vector<1x1x52xf32>
    %1 = vector.shape_cast %0 : vector<1x1x52xf32> to vector<1x52xf32>
    %c0_2 = arith.constant 0 : index
    %c0_3 = arith.constant 0 : index
    %2 = vector.load %arg3[%c0_2, %c0_3] : memref<32x3xf32, #tpu.memory_space<vmem>>, vector<32x3xf32>
    %c0_4 = arith.constant 0 : index
    %c0_5 = arith.constant 0 : index
    %3 = vector.load %arg4[%c0_4, %c0_5] : memref<32x1xf32, #tpu.memory_space<vmem>>, vector<32x1xf32>
    %c0_6 = arith.constant 0 : index
    %c0_7 = arith.constant 0 : index
    %4 = vector.load %arg5[%c0_6, %c0_7] : memref<32x96xf32, #tpu.memory_space<vmem>>, vector<32x96xf32>
    %c0_8 = arith.constant 0 : index
    %c0_9 = arith.constant 0 : index
    %5 = vector.load %arg6[%c0_8, %c0_9] : memref<32x1xf32, #tpu.memory_space<vmem>>, vector<32x1xf32>
    %c0_10 = arith.constant 0 : index
    %c0_11 = arith.constant 0 : index
    %6 = vector.load %arg11[%c0_10, %c0_11] : memref<52x52xf32, #tpu.memory_space<vmem>>, vector<52x52xf32>
    %c0_12 = arith.constant 0 : index
    %c0_13 = arith.constant 0 : index
    %7 = vector.load %arg12[%c0_12, %c0_13] : memref<26x26xf32, #tpu.memory_space<vmem>>, vector<26x26xf32>
    %cst = arith.constant 0.000000e+00 : f32
    %8 = vector.broadcast %cst : f32 to vector<1x1xf32>
    %9 = tpu.concatenate %8, %1, %8 in 1 : vector<1x1xf32>, vector<1x52xf32>, vector<1x1xf32> -> vector<1x54xf32>
    %10 = vector.extract_strided_slice %9 {offsets = [0, 0], sizes = [1, 52], strides = [1, 1]} : vector<1x54xf32> to vector<1x52xf32>
    %11 = vector.extract_strided_slice %9 {offsets = [0, 1], sizes = [1, 52], strides = [1, 1]} : vector<1x54xf32> to vector<1x52xf32>
    %12 = vector.extract_strided_slice %9 {offsets = [0, 2], sizes = [1, 52], strides = [1, 1]} : vector<1x54xf32> to vector<1x52xf32>
    %13 = tpu.concatenate %10, %11, %12 in 0 : vector<1x52xf32>, vector<1x52xf32>, vector<1x52xf32> -> vector<3x52xf32>
    %cst_14 = arith.constant dense<0.000000e+00> : vector<32x52xf32>
    %14 = tpu.matmul %2, %13, %cst_14 {dimension_numbers = #tpu.dot_dimension_numbers<[1], [0], [0], [1], [0, 0, 1, 1], [], []>} : vector<32x3xf32>, vector<3x52xf32>, vector<32x52xf32> -> vector<32x52xf32>
    %15 = vector.broadcast %3 : vector<32x1xf32> to vector<32x52xf32>
    %16 = arith.addf %14, %15 : vector<32x52xf32>
    %cst_15 = arith.constant 0.000000e+00 : f32
    %17 = vector.broadcast %cst_15 : f32 to vector<32x52xf32>
    %18 = arith.maximumf %16, %17 : vector<32x52xf32>
    %cst_16 = arith.constant dense<0.000000e+00> : vector<32x52xf32>
    %19 = tpu.matmul %18, %6, %cst_16 {dimension_numbers = #tpu.dot_dimension_numbers<[1], [0], [0], [1], [0, 0, 1, 1], [], []>} : vector<32x52xf32>, vector<52x52xf32>, vector<32x52xf32> -> vector<32x52xf32>
    %20 = vector.extract_strided_slice %19 {offsets = [0, 0], sizes = [32, 26], strides = [1, 1]} : vector<32x52xf32> to vector<32x26xf32>
    %21 = vector.extract_strided_slice %19 {offsets = [0, 26], sizes = [32, 26], strides = [1, 1]} : vector<32x52xf32> to vector<32x26xf32>
    %22 = arith.maximumf %20, %21 : vector<32x26xf32>
    %cst_17 = arith.constant 0.000000e+00 : f32
    %23 = vector.broadcast %cst_17 : f32 to vector<32x1xf32>
    %24 = tpu.concatenate %23, %22, %23 in 1 : vector<32x1xf32>, vector<32x26xf32>, vector<32x1xf32> -> vector<32x28xf32>
    %25 = vector.extract_strided_slice %24 {offsets = [0, 0], sizes = [32, 26], strides = [1, 1]} : vector<32x28xf32> to vector<32x26xf32>
    %26 = vector.extract_strided_slice %24 {offsets = [0, 1], sizes = [32, 26], strides = [1, 1]} : vector<32x28xf32> to vector<32x26xf32>
    %27 = vector.extract_strided_slice %24 {offsets = [0, 2], sizes = [32, 26], strides = [1, 1]} : vector<32x28xf32> to vector<32x26xf32>
    %28 = tpu.concatenate %25, %26, %27 in 0 : vector<32x26xf32>, vector<32x26xf32>, vector<32x26xf32> -> vector<96x26xf32>
    %cst_18 = arith.constant dense<0.000000e+00> : vector<32x26xf32>
    %29 = tpu.matmul %4, %28, %cst_18 {dimension_numbers = #tpu.dot_dimension_numbers<[1], [0], [0], [1], [0, 0, 1, 1], [], []>} : vector<32x96xf32>, vector<96x26xf32>, vector<32x26xf32> -> vector<32x26xf32>
    %30 = vector.broadcast %5 : vector<32x1xf32> to vector<32x26xf32>
    %31 = arith.addf %29, %30 : vector<32x26xf32>
    %cst_19 = arith.constant 0.000000e+00 : f32
    %32 = vector.broadcast %cst_19 : f32 to vector<32x26xf32>
    %33 = arith.maximumf %31, %32 : vector<32x26xf32>
    %cst_20 = arith.constant dense<0.000000e+00> : vector<32x26xf32>
    %34 = tpu.matmul %33, %7, %cst_20 {dimension_numbers = #tpu.dot_dimension_numbers<[1], [0], [0], [1], [0, 0, 1, 1], [], []>} : vector<32x26xf32>, vector<26x26xf32>, vector<32x26xf32> -> vector<32x26xf32>
    %35 = vector.extract_strided_slice %34 {offsets = [0, 0], sizes = [32, 13], strides = [1, 1]} : vector<32x26xf32> to vector<32x13xf32>
    %36 = vector.extract_strided_slice %34 {offsets = [0, 13], sizes = [32, 13], strides = [1, 1]} : vector<32x26xf32> to vector<32x13xf32>
    %37 = arith.maximumf %35, %36 : vector<32x13xf32>
    %c0_21 = arith.constant 0 : index
    %c0_22 = arith.constant 0 : index
    %c0_23 = arith.constant 0 : index
    %38 = vector.load %arg15[%c0_21, %c0_22, %c0_23] : memref<1x32x13xf32, #tpu.memory_space<vmem>>, vector<1x32x13xf32>
    %39 = vector.shape_cast %38 : vector<1x32x13xf32> to vector<32x13xf32>
    %40 = vector.shape_cast %37 : vector<32x13xf32> to vector<1x32x13xf32>
    tpu.vector_store %arg15[%c0_21, %c0_22, %c0_23], %40 {strides = array<i32>} : memref<1x32x13xf32, #tpu.memory_space<vmem>>, vector<1x32x13xf32>,
    %c0_24 = arith.constant 0 : index
    %c0_25 = arith.constant 0 : index
    %c0_26 = arith.constant 0 : index
    %41 = vector.load %arg2[%c0_24, %c0_25, %c0_26] : memref<1x1x76xf32, #tpu.memory_space<vmem>>, vector<1x1x76xf32>
    %42 = vector.shape_cast %41 : vector<1x1x76xf32> to vector<1x76xf32>
    %c0_27 = arith.constant 0 : index
    %c0_28 = arith.constant 0 : index
    %43 = vector.load %arg7[%c0_27, %c0_28] : memref<32x3xf32, #tpu.memory_space<vmem>>, vector<32x3xf32>
    %c0_29 = arith.constant 0 : index
    %c0_30 = arith.constant 0 : index
    %44 = vector.load %arg8[%c0_29, %c0_30] : memref<32x1xf32, #tpu.memory_space<vmem>>, vector<32x1xf32>
    %c0_31 = arith.constant 0 : index
    %c0_32 = arith.constant 0 : index
    %45 = vector.load %arg9[%c0_31, %c0_32] : memref<32x96xf32, #tpu.memory_space<vmem>>, vector<32x96xf32>
    %c0_33 = arith.constant 0 : index
    %c0_34 = arith.constant 0 : index
    %46 = vector.load %arg10[%c0_33, %c0_34] : memref<32x1xf32, #tpu.memory_space<vmem>>, vector<32x1xf32>
    %c0_35 = arith.constant 0 : index
    %c0_36 = arith.constant 0 : index
    %47 = vector.load %arg13[%c0_35, %c0_36] : memref<76x76xf32, #tpu.memory_space<vmem>>, vector<76x76xf32>
    %c0_37 = arith.constant 0 : index
    %c0_38 = arith.constant 0 : index
    %48 = vector.load %arg14[%c0_37, %c0_38] : memref<38x38xf32, #tpu.memory_space<vmem>>, vector<38x38xf32>
    %cst_39 = arith.constant 0.000000e+00 : f32
    %49 = vector.broadcast %cst_39 : f32 to vector<1x1xf32>
    %50 = tpu.concatenate %49, %42, %49 in 1 : vector<1x1xf32>, vector<1x76xf32>, vector<1x1xf32> -> vector<1x78xf32>
    %51 = vector.extract_strided_slice %50 {offsets = [0, 0], sizes = [1, 76], strides = [1, 1]} : vector<1x78xf32> to vector<1x76xf32>
    %52 = vector.extract_strided_slice %50 {offsets = [0, 1], sizes = [1, 76], strides = [1, 1]} : vector<1x78xf32> to vector<1x76xf32>
    %53 = vector.extract_strided_slice %50 {offsets = [0, 2], sizes = [1, 76], strides = [1, 1]} : vector<1x78xf32> to vector<1x76xf32>
    %54 = tpu.concatenate %51, %52, %53 in 0 : vector<1x76xf32>, vector<1x76xf32>, vector<1x76xf32> -> vector<3x76xf32>
    %cst_40 = arith.constant dense<0.000000e+00> : vector<32x76xf32>
    %55 = tpu.matmul %43, %54, %cst_40 {dimension_numbers = #tpu.dot_dimension_numbers<[1], [0], [0], [1], [0, 0, 1, 1], [], []>} : vector<32x3xf32>, vector<3x76xf32>, vector<32x76xf32> -> vector<32x76xf32>
    %56 = vector.broadcast %44 : vector<32x1xf32> to vector<32x76xf32>
    %57 = arith.addf %55, %56 : vector<32x76xf32>
    %cst_41 = arith.constant 0.000000e+00 : f32
    %58 = vector.broadcast %cst_41 : f32 to vector<32x76xf32>
    %59 = arith.maximumf %57, %58 : vector<32x76xf32>
    %cst_42 = arith.constant dense<0.000000e+00> : vector<32x76xf32>
    %60 = tpu.matmul %59, %47, %cst_42 {dimension_numbers = #tpu.dot_dimension_numbers<[1], [0], [0], [1], [0, 0, 1, 1], [], []>} : vector<32x76xf32>, vector<76x76xf32>, vector<32x76xf32> -> vector<32x76xf32>
    %61 = vector.extract_strided_slice %60 {offsets = [0, 0], sizes = [32, 38], strides = [1, 1]} : vector<32x76xf32> to vector<32x38xf32>
    %62 = vector.extract_strided_slice %60 {offsets = [0, 38], sizes = [32, 38], strides = [1, 1]} : vector<32x76xf32> to vector<32x38xf32>
    %63 = arith.maximumf %61, %62 : vector<32x38xf32>
    %cst_43 = arith.constant 0.000000e+00 : f32
    %64 = vector.broadcast %cst_43 : f32 to vector<32x1xf32>
    %65 = tpu.concatenate %64, %63, %64 in 1 : vector<32x1xf32>, vector<32x38xf32>, vector<32x1xf32> -> vector<32x40xf32>
    %66 = vector.extract_strided_slice %65 {offsets = [0, 0], sizes = [32, 38], strides = [1, 1]} : vector<32x40xf32> to vector<32x38xf32>
    %67 = vector.extract_strided_slice %65 {offsets = [0, 1], sizes = [32, 38], strides = [1, 1]} : vector<32x40xf32> to vector<32x38xf32>
    %68 = vector.extract_strided_slice %65 {offsets = [0, 2], sizes = [32, 38], strides = [1, 1]} : vector<32x40xf32> to vector<32x38xf32>
    %69 = tpu.concatenate %66, %67, %68 in 0 : vector<32x38xf32>, vector<32x38xf32>, vector<32x38xf32> -> vector<96x38xf32>
    %cst_44 = arith.constant dense<0.000000e+00> : vector<32x38xf32>
    %70 = tpu.matmul %45, %69, %cst_44 {dimension_numbers = #tpu.dot_dimension_numbers<[1], [0], [0], [1], [0, 0, 1, 1], [], []>} : vector<32x96xf32>, vector<96x38xf32>, vector<32x38xf32> -> vector<32x38xf32>
    %71 = vector.broadcast %46 : vector<32x1xf32> to vector<32x38xf32>
    %72 = arith.addf %70, %71 : vector<32x38xf32>
    %cst_45 = arith.constant 0.000000e+00 : f32
    %73 = vector.broadcast %cst_45 : f32 to vector<32x38xf32>
    %74 = arith.maximumf %72, %73 : vector<32x38xf32>
    %cst_46 = arith.constant dense<0.000000e+00> : vector<32x38xf32>
    %75 = tpu.matmul %74, %48, %cst_46 {dimension_numbers = #tpu.dot_dimension_numbers<[1], [0], [0], [1], [0, 0, 1, 1], [], []>} : vector<32x38xf32>, vector<38x38xf32>, vector<32x38xf32> -> vector<32x38xf32>
    %76 = vector.extract_strided_slice %75 {offsets = [0, 0], sizes = [32, 19], strides = [1, 1]} : vector<32x38xf32> to vector<32x19xf32>
    %77 = vector.extract_strided_slice %75 {offsets = [0, 19], sizes = [32, 19], strides = [1, 1]} : vector<32x38xf32> to vector<32x19xf32>
    %78 = arith.maximumf %76, %77 : vector<32x19xf32>
    %c0_47 = arith.constant 0 : index
    %c0_48 = arith.constant 0 : index
    %c0_49 = arith.constant 0 : index
    %79 = vector.load %arg16[%c0_47, %c0_48, %c0_49] : memref<1x32x19xf32, #tpu.memory_space<vmem>>, vector<1x32x19xf32>
    %80 = vector.shape_cast %79 : vector<1x32x19xf32> to vector<32x19xf32>
    %81 = vector.shape_cast %78 : vector<32x19xf32> to vector<1x32x19xf32>
    tpu.vector_store %arg16[%c0_47, %c0_48, %c0_49], %81 {strides = array<i32>} : memref<1x32x19xf32, #tpu.memory_space<vmem>>, vector<1x32x19xf32>,
    return
  }
  func.func @transform_0(%arg0: i32) -> (i32, i32, i32) {
    %c0_i32 = arith.constant 0 : i32
    %c0_i32_0 = arith.constant 0 : i32
    %c0_i32_1 = arith.constant 0 : i32
    return %arg0, %c0_i32, %c0_i32_0 : i32, i32, i32
  }
  func.func @transform_1(%arg0: i32) -> (i32, i32, i32) {
    %c0_i32 = arith.constant 0 : i32
    %c0_i32_0 = arith.constant 0 : i32
    %c0_i32_1 = arith.constant 0 : i32
    return %arg0, %c0_i32, %c0_i32_0 : i32, i32, i32
  }
  func.func @transform_2(%arg0: i32) -> (i32, i32) {
    %c0_i32 = arith.constant 0 : i32
    %c0_i32_0 = arith.constant 0 : i32
    %c0_i32_1 = arith.constant 0 : i32
    return %c0_i32, %c0_i32_0 : i32, i32
  }
  func.func @transform_3(%arg0: i32) -> (i32, i32) {
    %c0_i32 = arith.constant 0 : i32
    %c0_i32_0 = arith.constant 0 : i32
    %c0_i32_1 = arith.constant 0 : i32
    return %c0_i32, %c0_i32_0 : i32, i32
  }
  func.func @transform_4(%arg0: i32) -> (i32, i32) {
    %c0_i32 = arith.constant 0 : i32
    %c0_i32_0 = arith.constant 0 : i32
    %c0_i32_1 = arith.constant 0 : i32
    return %c0_i32, %c0_i32_0 : i32, i32
  }
  func.func @transform_5(%arg0: i32) -> (i32, i32) {
    %c0_i32 = arith.constant 0 : i32
    %c0_i32_0 = arith.constant 0 : i32
    %c0_i32_1 = arith.constant 0 : i32
    return %c0_i32, %c0_i32_0 : i32, i32
  }
  func.func @transform_6(%arg0: i32) -> (i32, i32) {
    %c0_i32 = arith.constant 0 : i32
    %c0_i32_0 = arith.constant 0 : i32
    %c0_i32_1 = arith.constant 0 : i32
    return %c0_i32, %c0_i32_0 : i32, i32
  }
  func.func @transform_7(%arg0: i32) -> (i32, i32) {
    %c0_i32 = arith.constant 0 : i32
    %c0_i32_0 = arith.constant 0 : i32
    %c0_i32_1 = arith.constant 0 : i32
    return %c0_i32, %c0_i32_0 : i32, i32
  }
  func.func @transform_8(%arg0: i32) -> (i32, i32) {
    %c0_i32 = arith.constant 0 : i32
    %c0_i32_0 = arith.constant 0 : i32
    %c0_i32_1 = arith.constant 0 : i32
    return %c0_i32, %c0_i32_0 : i32, i32
  }
  func.func @transform_9(%arg0: i32) -> (i32, i32) {
    %c0_i32 = arith.constant 0 : i32
    %c0_i32_0 = arith.constant 0 : i32
    %c0_i32_1 = arith.constant 0 : i32
    return %c0_i32, %c0_i32_0 : i32, i32
  }
  func.func @transform_10(%arg0: i32) -> (i32, i32) {
    %c0_i32 = arith.constant 0 : i32
    %c0_i32_0 = arith.constant 0 : i32
    %c0_i32_1 = arith.constant 0 : i32
    return %c0_i32, %c0_i32_0 : i32, i32
  }
  func.func @transform_11(%arg0: i32) -> (i32, i32) {
    %c0_i32 = arith.constant 0 : i32
    %c0_i32_0 = arith.constant 0 : i32
    %c0_i32_1 = arith.constant 0 : i32
    return %c0_i32, %c0_i32_0 : i32, i32
  }
  func.func @transform_12(%arg0: i32) -> (i32, i32) {
    %c0_i32 = arith.constant 0 : i32
    %c0_i32_0 = arith.constant 0 : i32
    %c0_i32_1 = arith.constant 0 : i32
    return %c0_i32, %c0_i32_0 : i32, i32
  }
  func.func @transform_13(%arg0: i32) -> (i32, i32) {
    %c0_i32 = arith.constant 0 : i32
    %c0_i32_0 = arith.constant 0 : i32
    %c0_i32_1 = arith.constant 0 : i32
    return %c0_i32, %c0_i32_0 : i32, i32
  }
  func.func @transform_14(%arg0: i32) -> (i32, i32, i32) {
    %c0_i32 = arith.constant 0 : i32
    %c0_i32_0 = arith.constant 0 : i32
    %c0_i32_1 = arith.constant 0 : i32
    return %arg0, %c0_i32, %c0_i32_0 : i32, i32, i32
  }
  func.func @transform_15(%arg0: i32) -> (i32, i32, i32) {
    %c0_i32 = arith.constant 0 : i32
    %c0_i32_0 = arith.constant 0 : i32
    %c0_i32_1 = arith.constant 0 : i32
    return %arg0, %c0_i32, %c0_i32_0 : i32, i32, i32
  }
}

</mosaic_0001>

<bundles_post_ra>
// kernel: tpu_custom_call.1
= control target key start
LH: loop header
LB: loop body
LE: loop exit
PB: predicated region body
PF: predicated region fallthrough
CT: control target
= control target key end

     0   :  { %s3145_s0 = inlined_call_operand.hbm [shape: f32[2,1,52], index: 0, kind: input, shape index: {}]   ;;  %s3146_s1 = inlined_call_operand.hbm [shape: f32[2,1,76], index: 1, kind: input, shape index: {}]   ;;  %s3147_s2 = inlined_call_operand.vmem [shape: f32[32,3], index: 2, kind: input, shape index: {}]   ;;  %s3148_s3 = inlined_call_operand.vmem [shape: f32[32,1], index: 3, kind: input, shape index: {}]   ;;  %s3149_s4 = inlined_call_operand.vmem [shape: f32[32,96], index: 4, kind: input, shape index: {}]   ;;  %s3150_s5 = inlined_call_operand.vmem [shape: f32[32,1], index: 5, kind: input, shape index: {}]   ;;  %s3151_s6 = inlined_call_operand.vmem [shape: f32[32,3], index: 6, kind: input, shape index: {}]   ;;  %s3152_s7 = inlined_call_operand.vmem [shape: f32[32,1], index: 7, kind: input, shape index: {}]   ;;  %s3153_s8 = inlined_call_operand.hbm [shape: f32[32,96], index: 8, kind: input, shape index: {}]   ;;  %s3154_s9 = inlined_call_operand.vmem [shape: f32[32,1], index: 9, kind: input, shape index: {}]   ;;  %s3155_s10 = inlined_call_operand.vmem [shape: f32[52,52], index: 10, kind: input, shape index: {}]   ;;  %s3156_s11 = inlined_call_operand.vmem [shape: f32[26,26], index: 11, kind: input, shape index: {}]   ;;  %s3157_s12 = inlined_call_operand.vmem [shape: f32[76,76], index: 12, kind: input, shape index: {}]   ;;  %s3158_s13 = inlined_call_operand.vmem [shape: f32[38,38], index: 13, kind: input, shape index: {}]   ;;  %s3159_s14 = inlined_call_operand.vmem [shape: f32[2,32,13], index: 14, kind: output, shape index: {0}]   ;;  %s3160_s15 = inlined_call_operand.vmem [shape: f32[2,32,19], index: 15, kind: output, shape index: {1}]  }
   0x1   :  { %3169 = sst [smem:[#allocation12_spill]] %s3145_s0 }
   0x2   :  { %3170 = sst [smem:[#allocation13_spill]] %s3151_s6 }
   0x3   :  { %3171 = sst [smem:[#allocation14_spill]] %s3153_s8 }
   0x4   :  { %3172 = sst [smem:[#allocation15_spill]] %s3154_s9 }
   0x5   :  { %3173 = sst [smem:[#allocation16_spill]] %s3158_s13 }
   0x6   :  { %3174 = sst [smem:[#allocation17_spill]] %s3159_s14 }
   0x7   :  { %3175 = sst [smem:[#allocation18_spill]] %s3160_s15 }
   0x8   :  { %21 = vsyncpa [#allocation3], 0 }
   0x9   :  { %23 = vsyncpa [#allocation3 + $0x1], 0 }
   0xa   :  { %24 = vsyncpa [#allocation5], 0 }
   0xb   :  { %26 = vsyncpa [#allocation5 + $0x1], 0  ;;  %s2680_s18 = smov 0   ;;  %s2682_s19 = smov 0  }
   0xc   :  { %s2684_s20 = smov 0   ;;  %s2686_s21 = smov 0  }
   0xd LB: > { %s2699_s22 = sadd.s32 4294967295, %s2584_s21   ;;  %p52_p0 = scmp.ne.s32.totalorder %s2576_s19, %s2572_s18  ;;  %s2584_s21 = sphi %s2686_s21, %s3197_s21   ;;  %s2580_s20 = sphi %s2684_s20, %s3201_s20   ;;  %s2576_s19 = sphi %s2682_s19, %s3200_s19   ;;  %s2572_s18 = sphi %s2680_s18, %s3199_s18  }
   0xe   : > { %p3163_p1 = scmp.eq.s32.totalorder %s2699_s22, 0  ;;  %p1899_p2 = scmp.ge.s32.totalorder %s2584_s21, 1 }
   0xf   : > { %p393_p3 = scmp.lt.s32.totalorder %s2584_s21, 3  ;;  %s2586_s25 = smov [#allocation6]  }
  0x10   : > { %p2707_p4 = por %p3163_p1, %p52_p0  ;;  %s423_s26 = sshll.u32 %s2586_s25, 4  ;;  %s424_s26 = int_to_ptr.vmem [resolvable:$true] %s423_s26 }
  0x11   : > { %p2711_p5 = pnand %p1899_p2, %p393_p3  ;;  %s2724_s28 = sadd.s32 1, %s2584_s21  }
  0x12   : > { %s3176_s23 = scalar_select %p2707_p4, 1, 0 }
  0x13   : > { %s3177_s24 = scalar_select %p2711_p5, 1, 0 }
  0x14   : > { %p2314_p6 = pneg %p2711_p5  ;;  %3179 = sst [smem:[#allocation10_spill]] %s2724_s28 }
  0x15   : > { %s39_s29 = sadd.s32 1, %s2580_s20  ;;  %s36_s30 = ssub.s32 %s2584_s21, %s2724_s28 }
  0x16   : > { %p2719_p7 = pnand %p2314_p6, %p3163_p1  ;;  %s3180_s8 = sld [smem:[#allocation14_spill]] }
  0x18   : > { %p2456_p9 = pneg %p2719_p7 }
  0x1c   : > { %s2454_s18 = scalar_lea.hbm %s3180_s8, 512 }
  0x1d   : > { %p2455_p8 = scmp.ne.s32.totalorder %s3180_s8, %s2454_s18  ;;  %p2461_p12 = scmp.lt.u32.totalorder %s2454_s18, %s3180_s8 }
  0x1f   : > { %p2457_p10 = pnand %p2456_p9, %p2455_p8 }
  0x21   : > { %p2458_p11 = pneg %p2457_p10 }
  0x23   : > { %p2463_p13 = pnand %p2461_p12, %p2458_p11 }
  0x25   : > { %2466 = shalt.err (!%p2463_p13)
}
  0x26   : > { %s2467_s9 = scalar_lea.vmem %s424_s26, 512  ;;  %p2475_p6 = scmp.lt.s32.totalorder %s424_s26, %s424_s26 }
  0x27   : > { %p2468_p0 = scmp.ne.s32.totalorder %s424_s26, %s2467_s9  ;;  %p2476_p1 = scmp.lt.s32.totalorder %s2467_s9, %s2467_s9 }
  0x29   : > { %p2470_p2 = pnand %p2468_p0, %p2456_p9  ;;  %p2477_p4 = por %p2476_p1, %p2475_p6 }
  0x2b   : > { %p2471_p3 = pneg %p2470_p2 }
  0x2d   : > { %p2478_p5 = pnand %p2477_p4, %p2471_p3 }
  0x2f   : > { %2481 = shalt.err (!%p2478_p5)
}
  0x30   : > { %s2587_s15 = smov 128   ;;  %s2588_s13 = smov 8  }
  0x31   : > { %2317 = dma.hbm_to_vmem [thread:$0]  (!%p2719_p7), %s3180_s8, 512, %s424_s26, [#allocation5], %s2587_s15, %s2587_s15, %s2588_s13  }
  0x32   : > { %p37_p8 = scmp.eq.s32.totalorder %s36_s30, 0  ;;  %p46_p1 = scmp.ne.s32.totalorder %s2580_s20, %s2576_s19 }
  0x33   : > { %p47_p4 = scmp.eq.s32.totalorder %s2584_s21, 0  ;;  %p2326_p5 = scmp.lt.s32.totalorder %s2584_s21, 2 }
  0x34   : > { %s2750_s9 = scalar_select %p37_p8, %s2580_s20, %s39_s29  }
  0x35   : > { %p48_p9 = por %p47_p4, %p46_p1  ;;  %s2753_s17 = sand.u32 1, %s2580_s20  }
  0x36   : > { %3181 = sst [smem:[#allocation11_spill]] %s2750_s9  ;;  %s1902_s18 = sshll.u32 %s2584_s21, 4 }
  0x37   : > { %s455_s25 = scalar_lea.vmem [#allocation2], %s2753_s17  ;;  %s3182_s0 = sld [smem:[#allocation12_spill]] }
  0x38   : > { %s462_s28 = sshll.u32 %s455_s25, 4  ;;  %p2764_p7 = pnand %p2326_p5, %p48_p9  ;;  %s2762_s28 = int_to_ptr.vmem [resolvable:$true] %s462_s28 }
  0x39   : > { %s2771_s15 = scalar_lea.hbm %s3146_s1, %s1902_s18  ;;  %s469_s6 = sand.u32 1, %s2584_s21  }
  0x3a   : > { %s453_s13 = scalar_lea.sflag [#allocation3], %s2753_s17  ;;  %p2484_p11 = pneg %p2764_p7 }
  0x3d   : > { %s2760_s14 = scalar_lea.hbm %s3182_s0, %s1902_s18  ;;  %s2487_s8 = scalar_lea.hbm %s3182_s0, 32 }
  0x3e   : > { %s2482_s16 = scalar_lea.hbm %s2760_s14, 16  ;;  %p2488_p0 = scmp.lt.u32.totalorder %s2760_s14, %s3182_s0 }
  0x3f   : > { %p2483_p10 = scmp.ne.s32.totalorder %s2760_s14, %s2482_s16  ;;  %p2489_p2 = scmp.lt.u32.totalorder %s2487_s8, %s2482_s16 }
  0x40   : > { %p2491_p6 = scmp.lt.u32.totalorder %s2482_s16, %s2760_s14 }
  0x41   : > { %p2485_p12 = pnand %p2484_p11, %p2483_p10  ;;  %p2490_p3 = por %p2489_p2, %p2488_p0 }
  0x43   : > { %p2486_p13 = pneg %p2485_p12  ;;  %p2492_p8 = por %p2491_p6, %p2490_p3 }
  0x45   : > { %p2493_p1 = pnand %p2492_p8, %p2486_p13 }
  0x47   : > { %2496 = shalt.err (!%p2493_p1)
}
  0x48   : > { %s2497_s18 = scalar_lea.vmem %s2762_s28, 16  ;;  %s2589_s30 = smov [#allocation2]  }
  0x49   : > { %p2498_p4 = scmp.ne.s32.totalorder %s2762_s28, %s2497_s18  ;;  %s2502_s25 = sshll.u32 %s2589_s30, 4  ;;  %s2503_s25 = int_to_ptr.vmem [resolvable:$false] %s2502_s25 }
  0x4a   : > { %s2504_s9 = scalar_lea.vmem %s2503_s25, 32  ;;  %p2505_p10 = scmp.lt.s32.totalorder %s2762_s28, %s2503_s25 }
  0x4b   : > { %p2500_p5 = pnand %p2498_p4, %p2484_p11  ;;  %p2506_p12 = scmp.lt.s32.totalorder %s2504_s9, %s2497_s18 }
  0x4d   : > { %p2501_p9 = pneg %p2500_p5  ;;  %p2507_p0 = por %p2506_p12, %p2505_p10 }
  0x4f   : > { %p2508_p2 = pnand %p2507_p0, %p2501_p9 }
  0x51   : > { %2511 = shalt.err (!%p2508_p2)
}
  0x52   : > { %2321 = dma.hbm_to_vmem [thread:$0]  (!%p2764_p7), %s2760_s14, 16, %s2762_s28, %s453_s13  }
  0x53   : > { %s472_s8 = scalar_lea.vmem [#allocation4], %s2753_s17  ;;  %s470_s27 = scalar_lea.sflag [#allocation5], %s469_s6 }
  0x54   : > { %s479_s16 = sshll.u32 %s472_s8, 4  ;;  %s2512_s29 = scalar_lea.hbm %s2771_s15, 16  ;;  %s480_s16 = int_to_ptr.vmem [resolvable:$true] %s479_s16 }
  0x55   : > { %p2513_p13 = scmp.ne.s32.totalorder %s2771_s15, %s2512_s29  ;;  %s2517_s25 = scalar_lea.hbm %s3146_s1, 32 }
  0x56   : > { %p2518_p8 = scmp.lt.u32.totalorder %s2771_s15, %s3146_s1  ;;  %p2519_p1 = scmp.lt.u32.totalorder %s2517_s25, %s2512_s29 }
  0x57   : > { %p2515_p3 = pnand %p2513_p13, %p2484_p11  ;;  %p2521_p5 = scmp.lt.u32.totalorder %s2512_s29, %s2771_s15 }
  0x58   : > { %p2520_p4 = por %p2519_p1, %p2518_p8 }
  0x59   : > { %p2516_p6 = pneg %p2515_p3 }
  0x5a   : > { %p2522_p9 = por %p2521_p5, %p2520_p4 }
  0x5c   : > { %p2523_p10 = pnand %p2522_p9, %p2516_p6 }
  0x5e   : > { %2526 = shalt.err (!%p2523_p10)
}
  0x5f   : > { %s2527_s21 = scalar_lea.vmem %s480_s16, 16  ;;  %s2590_s28 = smov [#allocation4]  }
  0x60   : > { %p2528_p12 = scmp.ne.s32.totalorder %s480_s16, %s2527_s21  ;;  %s2532_s17 = sshll.u32 %s2590_s28, 4  ;;  %s2533_s17 = int_to_ptr.vmem [resolvable:$false] %s2532_s17 }
  0x61   : > { %s2534_s14 = scalar_lea.vmem %s2533_s17, 32  ;;  %p2535_p13 = scmp.lt.s32.totalorder %s480_s16, %s2533_s17 }
  0x62   : > { %p2530_p0 = pnand %p2528_p12, %p2484_p11  ;;  %p2536_p3 = scmp.lt.s32.totalorder %s2534_s14, %s2527_s21 }
  0x64   : > { %p2531_p2 = pneg %p2530_p0  ;;  %p2537_p1 = por %p2536_p3, %p2535_p13 }
  0x66   : > { %p2538_p8 = pnand %p2537_p1, %p2531_p2 }
  0x68   : > { %2541 = shalt.err (!%p2538_p8)
}
  0x69   : > { %2324 = dma.hbm_to_vmem [thread:$0]  (!%p2764_p7), %s2771_s15, 16, %s480_s16, %s470_s27  }
  0x6a   : > { %p3184_p6 = scmp.ne.s32.totalorder %s3177_s24, 0 }
  0x6b   : > { %s2825_s0 = sand.u32 (!%p3184_p6), 1, %s2576_s19   ;;  %p3185_p11 = scmp.ne.s32.totalorder (!%p3184_p6), %s3176_s23, 0 }
  0x6c   : > { %488 = sbr.rel (%p3184_p6) target bundleno = 2762 (0xaca), region = 76  ;;  %s491_s6 = scalar_lea.sflag (!%p3184_p6), [#allocation3], %s2825_s0 }
  0x6d   : > { %s493_s13 = scalar_lea.vmem (!%p3184_p6), [#allocation2], %s2825_s0 }
  0x73   : > { %2559 = dma.done.wait (%p3185_p11), %s491_s6, 16  }
  0x74   : > { %2561 = vsyncadd (%p3185_p11), %s491_s6, 4294967280  ;;  %s498_s26 = sand.u32 1, %s2699_s22   ;;  %s501_s24 = scalar_lea.vmem [#allocation4], %s2825_s0 }
  0x75   : > { %s499_s15 = scalar_lea.sflag [#allocation5], %s498_s26 }
  0x76   : > { %2563 = dma.done.wait (%p3185_p11), %s499_s15, 16  }
  0x77   : > { %2565 = vsyncadd (%p3185_p11), %s499_s15, 4294967280  ;;  %p3186_p7 = scmp.eq.s32.totalorder %s2699_s22, 0 }
  0x79   : > { %2567 = dma.done.wait (%p3186_p7), [#allocation5], 512   ;;  %p3187_p4 = pmov %p3186_p7 }
  0x7a   : > { %v1910_v0 = vld [vmem:[%s493_s13] ss:$0 sm:$0xff]  ;;  %s2591_s8 = smov 1   ;;  %vm643_vm0 = vcmask 23552   ;;  %vm606_vm1 = vcmask 7168   ;;  %vm608_vm2 = vcmask 433152  }
  0x7b   : > { %2569 = vsyncadd (%p3187_p4), [#allocation5], 4294966784  ;;  %603 = vrot.lane.b32.xlu0 %v1910_v0, %s2591_s8  ;;  %v571_v1 = vld [vmem:[%s3147_s2] sm:$0xff]  ;;  %v2592_v4 = vmov 0   ;;  %s2593_s23 = smov 126   ;;  %s2594_s29 = smov 127  }
  0x7c   : > { %2048 = vmatprep.mubr.msk.f32.mxu0 %vm643_vm0, %v571_v1  ;;  %2372 = vset.pattern.permute.xlu1 %v2592_v4  ;;  %v575_v8 = vld [vmem:[%s3148_s3] sm:$0xff]  ;;  %v576_v9 = vld [vmem:[%s3148_s3 + $0x8] sm:$0xff]  ;;  %v577_v13 = vld [vmem:[%s3148_s3 + $0x10] sm:$0xff]  ;;  %vm619_vm3 = vcmask 1040384   ;;  %vm621_vm4 = vcmask 1041408   ;;  %vm656_vm5 = vcmask 1042432  }
  0x7d   : > { %2373 = vset.pattern.permute.xlu0 %v2592_v4  ;;  %v587_v10 = vld [vmem:[%s3155_s10] sm:$0xff]  ;;  %v588_v11 = vld [vmem:[%s3155_s10 + $0x8] sm:$0xff]  ;;  %v589_v14 = vld [vmem:[%s3155_s10 + $0x10] sm:$0xff]  ;;  %vm762_vm6 = vcmask 1043456   ;;  %vm749_vm7 = vcmask 424960   ;;  %s2595_s18 = smov 102  }
  0x7e   : > { %v2198_v12 = vpack.c.bf16 %v588_v11, %v587_v10  ;;  %v590_v15 = vld [vmem:[%s3155_s10 + $0x18] sm:$0xff]  ;;  %v572_v22 = vld [vmem:[%s3147_s2 + $0x8] sm:$0xff]  ;;  %v573_v23 = vld [vmem:[%s3147_s2 + $0x10] sm:$0xff]  ;;  %vm891_vm8 = vcmask 220160   ;;  %vm944_vm10 = vcmask 785408   ;;  %vm2596_vm11 = vmmov 1  }
  0x7f   : > { %v2202_v16 = vpack.c.bf16 %v590_v15, %v589_v14  ;;  %v578_v17 = vld [vmem:[%s3148_s3 + $0x18] sm:$0xff]  ;;  %v591_v25 = vld [vmem:[%s3155_s10 + $0x20] sm:$0xff]  ;;  %v592_v26 = vld [vmem:[%s3155_s10 + $0x28] sm:$0xff]  ;;  %vm1213_vm13 = vcmask 629760   ;;  %vm1046_vm14 = vcmask 211968   ;;  %s3190_s13 = sld [smem:[#allocation13_spill]] }
  0x80   : > { %2199 = vmatprep.subr.bf16.mxu1 %v2198_v12  ;;  %v574_v24 = vld [vmem:[%s3147_s2 + $0x18] sm:$0xff]  ;;  %v2206_v27 = vpack.c.bf16 %v592_v26, %v591_v25  ;;  %v593_v28 = vld [vmem:[%s3155_s10 + $0x30] sm:$0xf]  ;;  %vm2908_vm9 = vmpackc.low %vm891_vm8, %vm891_vm8  ;;  %s2597_s27 = smov 90   ;;  %s3193_s30 = sld [smem:[#allocation15_spill]] }
  0x81   : > { %2201 = vmatpush3.bf16.msra.mxu1 %v2198_v12  ;;  %v595_v25 = vld [vmem:[%s3156_s11 + $0x8] sm:$0xff]  ;;  %vm2243_vm12 = vmpackc.low %vm621_vm4, %vm2596_vm11  ;;  %s2598_s0 = smov 115   ;;  %s3194_s14 = sld [smem:[#allocation16_spill]] }
  0x82   : > { %2203 = vmatprep.subr.bf16.mxu1 %v2202_v16  ;;  %vm2265_vm15 = vmpackc.low %vm762_vm6, %vm2596_vm11  ;;  %p560_p5 = scmp.lt.s32.totalorder %s2699_s22, 1  ;;  %s3196_s6 = sld [smem:[#allocation18_spill]] }
  0x84   : > { %s3203_s22 = smov (!%p560_p5, %s2699_s22), 1 }
  0x85   : > { %2205 = vmatpush3.bf16.msra.mxu1 %v2202_v16  ;;  %s1960_s15 = sshll.u32 %s3203_s22, 5 }
  0x86   : > { %2207 = vmatprep.subr.bf16.mxu1 %v2206_v27 }
  0x88   : > { %s569_s26 = scalar_lea.vmem %s3196_s6, %s1960_s15 }
  0x89   : > { %2209 = vmatpush3.bf16.msra.mxu1 %v2206_v27  ;;  %v596_v27 = vld [vmem:[%s3156_s11 + $0x10] sm:$0xff] }
  0x8a   : > { %2066 = vmatprep.subr.msk.mxu1 %vm762_vm6, %v593_v28 }
  0x8d   : > { %2067 = vmatpush3.msk.msra.mxu1 %vm762_vm6, %v593_v28  ;;  %v597_v28 = vld [vmem:[%s3156_s11 + $0x18] sm:$0x3]  ;;  %vm1767_vm6 = vcmask 154624  }
  0xed   : > { %v604_v2 = vpop.permute.xlu0 %603 }
  0xee   : > { %v607_v3 = vsel %vm606_vm1, 0.0, %v604_v2 }
  0xef   : > { %v609_v5 = vsel %vm608_vm2, %v607_v3, 0.0  ;;  %vm1491_vm2 = vcmask 318464  }
  0xf0   : > { %v611_v6 = vrot.slane %v609_v5, 7  ;;  %v615_v7 = vrot.slane %v609_v5, 6 }
  0xf2   : > { %616 = vrot.lane.b32.xlu1 %v615_v7, %s2593_s23  ;;  %612 = vrot.lane.b32.xlu0 %v611_v6, %s2594_s29 }
  0xf6   : > { %625 = vperm.xlu1 %2372, %v575_v8   ;;  %630 = vperm.xlu0 %2373, %v576_v9  }
  0xfa   : > { %635 = vperm.xlu1 %2372, %v577_v13  }
  0xfe   : > { %640 = vperm.xlu1 %2372, %v578_v17  }
 0x164   : > { %v617_v18 = vpop.permute.xlu1 %616  ;;  %v613_v19 = vpop.permute.xlu0 %612 }
 0x165   : > { %v620_v20 = vsel %vm619_vm3, %v609_v5, %v613_v19  ;;  %v579_v19 = vld [vmem:[%s3149_s4] sm:$0xff] }
 0x166   : > { %v622_v21 = vsel %vm621_vm4, %v620_v20, %v617_v18  ;;  %v1934_v18 = vld [vmem:[%s501_s24] ss:$0 sm:$0xff]  ;;  %v584_v20 = vld [vmem:[%s3150_s5 + $0x8] sm:$0xff] }
 0x167   : > { %2046 = vmatprep.subr.msk.mxu0 %vm656_vm5, %v622_v21 }
 0x168   : > { %2047 = vmatpush3.msk.msra.mxu0 %vm656_vm5, %v622_v21  ;;  %v583_v21 = vld [vmem:[%s3150_s5] sm:$0xff] }
 0x169   : > { %2049 = vmatmul.mubr.msk.f32.vlgmr.msra.gmra.mrb[0].mxu0 %vm643_vm0, %v572_v22  ;;  %v586_v22 = vld [vmem:[%s3150_s5 + $0x18] sm:$0xff] }
 0x16a   : > { %2051 = vmatprep.mubr.msk.f32.mxu0 %vm643_vm0, %v573_v23  ;;  %v585_v23 = vld [vmem:[%s3150_s5 + $0x10] sm:$0xff] }
 0x16d   : > { %2052 = vmatmul.mubr.msk.f32.gmra.mrb[2].mxu0 %vm643_vm0, %v574_v24  ;;  %v594_v24 = vld [vmem:[%s3156_s11] sm:$0xff] }
 0x16e   : > { %2098 = vmatprep.mubr.msk.f32.mxu0 %vm944_vm10, %v579_v19  ;;  %v2238_v26 = vpack.c.bf16 %v595_v25, %v594_v24  ;;  %v1193_v24 = vld [vmem:[%s3157_s12 + $0x20] sm:$0xff]  ;;  %v1194_v25 = vld [vmem:[%s3157_s12 + $0x28] sm:$0xff] }
 0x170   : > { %2239 = vmatprep.subr.bf16.mxu1 %v2238_v26 }
 0x175   : > { %v626_v29 = vpop.permute.xlu1 %625  ;;  %v631_v31 = vpop.permute.xlu0 %630 }
 0x179   : > { %v636_v30 = vpop.permute.xlu1 %635 }
 0x17d   : > { %v641_v36 = vpop.permute.xlu1 %640 }
 0x23c   : > { %v2050_v32 = vpop.f32.mrb[0].mxu0 }
 0x23d   : > { %v732_v33 = vadd.f32 %v2050_v32, %v631_v31  ;;  %v726_v34 = vpop.f32.mrb[1].mxu0 }
 0x23e   : > { %v727_v35 = vadd.f32 %v726_v34, %v626_v29  ;;  %v2242_v29 = vpack.c.bf16 %v597_v28, %v596_v27  ;;  %v1195_v27 = vld [vmem:[%s3157_s12 + $0x30] sm:$0xff]  ;;  %v1196_v28 = vld [vmem:[%s3157_s12 + $0x38] sm:$0xff] }
 0x23f   : > { %v746_v39 = vmax.f32 %v732_v33, 0.0 }
 0x240   : > { %v745_v37 = vmax.f32 %v727_v35, 0.0  ;;  %v2053_v38 = vpop.f32.mrb[2].mxu0 }
 0x241   : > { %v742_v40 = vadd.f32 %v2053_v38, %v641_v36  ;;  %v736_v41 = vpop.f32.mrb[3].mxu0 }
 0x242   : > { %v737_v42 = vadd.f32 %v736_v41, %v636_v30  ;;  %2068 = vmatprep.mubr.msk.f32.mxu1 %vm749_vm7, %v745_v37 }
 0x243   : > { %2069 = vmatmul.mubr.msk.f32.vlgmr.msra.gmra.mrb[0].mxu1 %vm749_vm7, %v746_v39  ;;  %v748_v44 = vmax.f32 %v742_v40, 0.0 }
 0x244   : > { %v747_v43 = vmax.f32 %v737_v42, 0.0  ;;  %2241 = vmatpush3.bf16.msra.mxu1 %v2238_v26  ;;  %v2256_v26 = vpack.c.bf16 %v1194_v25, %v1193_v24 }
 0x245   : > { %2244 = vmatprep.subr.msk.bf16.mxu1 %vm2243_vm12, %v2242_v29 }
 0x246   : > { %2071 = vmatprep.mubr.msk.f32.mxu1 %vm749_vm7, %v747_v43 }
 0x247   : > { %2072 = vmatmul.mubr.msk.f32.gmra.mrb[2].mxu1 %vm749_vm7, %v748_v44 }
 0x248   : > { %2247 = vmatpush3.bf16.msk.msra.mxu1 %vm2243_vm12, %v2242_v29  ;;  %v2260_v29 = vpack.c.bf16 %v1196_v28, %v1195_v27  ;;  %v1181_v27 = vld [vmem:[#allocation6] sm:$0xff]  ;;  %v1187_v28 = vld [vmem:[%s3193_s30 + $0x10] sm:$0xff] }
 0x316   : > { %v2070_v45 = vpop.f32.mrb[0].mxu1 }
 0x317   : > { %v832_v46 = vpop.f32.mrb[1].mxu1 }
 0x318   : > { %v2374_v47 = vpack.i.bf16 %v2070_v45, %v832_v46 }
 0x31a   : > { %2375 = vrot.lane.b32.xlu0 %v2374_v47, %s2595_s18  ;;  %v2073_v48 = vpop.f32.mrb[2].mxu1 }
 0x31b   : > { %v842_v49 = vpop.f32.mrb[3].mxu1 }
 0x31c   : > { %v2379_v50 = vpack.i.bf16 %v2073_v48, %v842_v49 }
 0x31e   : > { %2380 = vrot.lane.b32.xlu1 %v2379_v50, %s2595_s18 }
 0x38c   : > { %v2376_v51 = vpop.permute.xlu0 %2375 }
 0x38d   : > { %v2378_v52 = vunpack.i.h.bf16 %v2376_v51  ;;  %v2377_v53 = vunpack.i.l.bf16 %v2376_v51  ;;  %v1178_v51 = vld [vmem:[%s3152_s7 + $0x8] sm:$0xff] }
 0x38f   : > { %v868_v54 = vmax.f32 %v2070_v45, %v2378_v52  ;;  %v867_v55 = vmax.f32 %v832_v46, %v2377_v53  ;;  %v1177_v52 = vld [vmem:[%s3152_s7] sm:$0xff]  ;;  %v1180_v53 = vld [vmem:[%s3152_s7 + $0x18] sm:$0xff] }
 0x390   : > { %v2381_v56 = vpop.permute.xlu1 %2380 }
 0x391   : > { %v2383_v57 = vunpack.i.h.bf16 %v2381_v56  ;;  %v2382_v58 = vunpack.i.l.bf16 %v2381_v56  ;;  %v2384_v59 = vpack.i.bf16 %v868_v54, %v867_v55  ;;  %v1179_v54 = vld [vmem:[%s3152_s7 + $0x10] sm:$0xff]  ;;  %v580_v55 = vld [vmem:[%s3149_s4 + $0x8] sm:$0xff] }
 0x392   : > { %v581_v56 = vld [vmem:[%s3149_s4 + $0x10] sm:$0xff] }
 0x393   : > { %v870_v60 = vmax.f32 %v2073_v48, %v2383_v57  ;;  %v869_v61 = vmax.f32 %v842_v49, %v2382_v58  ;;  %2385 = vrot.lane.b32.xlu0 %v2384_v59, %s2591_s8  ;;  %v582_v57 = vld [vmem:[%s3149_s4 + $0x18] sm:$0xff] }
 0x395   : > { %v2389_v62 = vpack.i.bf16 %v870_v60, %v869_v61 }
 0x397   : > { %2390 = vrot.lane.b32.xlu1 %v2389_v62, %s2591_s8  ;;  %v1189_v62 = vld [vmem:[%s3157_s12] sm:$0xff] }
 0x405   : > { %v2386_v63 = vpop.permute.xlu0 %2385 }
 0x406   : > { %v2388_v0 = vunpack.i.h.bf16 %v2386_v63  ;;  %v2387_v1 = vunpack.i.l.bf16 %v2386_v63  ;;  %v1190_v63 = vld [vmem:[%s3157_s12 + $0x8] sm:$0xff] }
 0x408   : > { %v888_v2 = vsel %vm606_vm1, 0.0, %v2388_v0  ;;  %v887_v3 = vsel %vm606_vm1, 0.0, %v2387_v1  ;;  %v1191_v0 = vld [vmem:[%s3157_s12 + $0x10] sm:$0xff]  ;;  %v2248_v1 = vpack.c.bf16 %v1190_v63, %v1189_v62 }
 0x409   : > { %v893_v5 = vsel %vm891_vm8, %v888_v2, 0.0  ;;  %v892_v6 = vsel %vm891_vm8, %v887_v3, 0.0  ;;  %v2210_v7 = vpack.c.bf16 %v888_v2, %v887_v3  ;;  %v2391_v8 = vpop.permute.xlu1 %2390  ;;  %v1192_v2 = vld [vmem:[%s3157_s12 + $0x18] sm:$0xff] }
 0x40a   : > { %v2393_v9 = vunpack.i.h.bf16 %v2391_v8  ;;  %v2392_v10 = vunpack.i.l.bf16 %v2391_v8  ;;  %v2394_v11 = vpack.i.bf16 %v893_v5, %v892_v6  ;;  %v2252_v3 = vpack.c.bf16 %v1192_v2, %v1191_v0 }
 0x40b   : > { %2212 = vmatprep.subr.msk.bf16.mxu0 %vm2908_vm9, %v2210_v7 }
 0x40c   : > { %v890_v12 = vsel %vm606_vm1, 0.0, %v2393_v9  ;;  %v889_v13 = vsel %vm606_vm1, 0.0, %v2392_v10  ;;  %2215 = vmatpush3.bf16.msk.msra.mxu0 %vm2908_vm9, %v2210_v7  ;;  %2395 = vrot.lane.b32.xlu0 %v2394_v11, %s2594_s29 }
 0x40d   : > { %v895_v14 = vsel %vm891_vm8, %v890_v12, 0.0  ;;  %v894_v15 = vsel %vm891_vm8, %v889_v13, 0.0  ;;  %v2216_v16 = vpack.c.bf16 %v890_v12, %v889_v13 }
 0x40e   : > { %v2399_v17 = vpack.i.bf16 %v895_v14, %v894_v15 }
 0x40f   : > { %2218 = vmatprep.subr.msk.bf16.mxu0 %vm2908_vm9, %v2216_v16 }
 0x410   : > { %2405 = vrot.lane.b32.xlu0 %v2394_v11, %s2593_s23  ;;  %2221 = vmatpush3.bf16.msk.msra.mxu0 %vm2908_vm9, %v2216_v16 }
 0x411   : > { %2400 = vrot.lane.b32.xlu1 %v2399_v17, %s2594_s29 }
 0x414   : > { %1209 = vrot.lane.b32.xlu0 %v1934_v18, %s2591_s8 }
 0x415   : > { %2410 = vrot.lane.b32.xlu1 %v2399_v17, %s2593_s23 }
 0x418   : > { %931 = vperm.xlu0 %2373, %v584_v20   ;;  %v1173_v20 = vld [vmem:[%s3190_s13] sm:$0xff] }
 0x419   : > { %926 = vperm.xlu1 %2372, %v583_v21   ;;  %v1174_v21 = vld [vmem:[%s3190_s13 + $0x8] sm:$0xff] }
 0x41c   : > { %941 = vperm.xlu0 %2373, %v586_v22   ;;  %v1175_v22 = vld [vmem:[%s3190_s13 + $0x10] sm:$0xff] }
 0x41d   : > { %936 = vperm.xlu1 %2372, %v585_v23   ;;  %v1176_v23 = vld [vmem:[%s3190_s13 + $0x18] sm:$0xff] }
 0x47e   : > { %v2396_v30 = vpop.permute.xlu0 %2395 }
 0x47f   : > { %v2398_v31 = vunpack.i.h.bf16 %v2396_v30  ;;  %v2397_v32 = vunpack.i.l.bf16 %v2396_v30  ;;  %v1197_v30 = vld [vmem:[%s3157_s12 + $0x40] sm:$0xff] }
 0x481   : > { %v2222_v33 = vpack.c.bf16 %v2398_v31, %v2397_v32  ;;  %v1198_v31 = vld [vmem:[%s3157_s12 + $0x48] sm:$0xf] }
 0x482   : > { %v2406_v34 = vpop.permute.xlu0 %2405  ;;  %v2264_v32 = vpack.c.bf16 %v1198_v31, %v1197_v30  ;;  %v1188_v30 = vld [vmem:[%s3193_s30 + $0x18] sm:$0xff]  ;;  %v1199_v31 = vld [vmem:[%s3194_s14] sm:$0xff] }
 0x483   : > { %v2401_v35 = vpop.permute.xlu1 %2400  ;;  %2223 = vmatprep.subr.bf16.mxu0 %v2222_v33  ;;  %v2408_v36 = vunpack.i.h.bf16 %v2406_v34  ;;  %v2407_v37 = vunpack.i.l.bf16 %v2406_v34 }
 0x484   : > { %v2403_v38 = vunpack.i.h.bf16 %v2401_v35  ;;  %v2402_v39 = vunpack.i.l.bf16 %v2401_v35  ;;  %2225 = vmatpush3.bf16.msra.mxu0 %v2222_v33 }
 0x485   : > { %v2230_v44 = vpack.c.bf16 %v2408_v36, %v2407_v37 }
 0x486   : > { %v2226_v40 = vpack.c.bf16 %v2403_v38, %v2402_v39  ;;  %v1210_v41 = vpop.permute.xlu0 %1209 }
 0x487   : > { %v1212_v42 = vsel %vm606_vm1, 0.0, %v1210_v41  ;;  %v2411_v43 = vpop.permute.xlu1 %2410 }
 0x488   : > { %v1214_v45 = vsel %vm1213_vm13, %v1212_v42, 0.0  ;;  %v2413_v46 = vunpack.i.h.bf16 %v2411_v43  ;;  %v2412_v47 = vunpack.i.l.bf16 %v2411_v43  ;;  %2227 = vmatprep.subr.bf16.mxu0 %v2226_v40 }
 0x489   : > { %v1216_v48 = vrot.slane %v1214_v45, 7  ;;  %v1220_v49 = vrot.slane %v1214_v45, 6  ;;  %2229 = vmatpush3.bf16.msra.mxu0 %v2226_v40 }
 0x48a   : > { %2231 = vmatprep.subr.bf16.mxu0 %v2230_v44  ;;  %v2234_v50 = vpack.c.bf16 %v2413_v46, %v2412_v47 }
 0x48b   : > { %1221 = vrot.lane.b32.xlu0 %v1220_v49, %s2593_s23  ;;  %1217 = vrot.lane.b32.xlu1 %v1216_v48, %s2594_s29 }
 0x48d   : > { %2233 = vmatpush3.bf16.msra.mxu0 %v2230_v44 }
 0x48e   : > { %2235 = vmatprep.subr.bf16.mxu0 %v2234_v50 }
 0x48f   : > { %1233 = vperm.xlu0 %2373, %v1178_v51   ;;  %1228 = vperm.xlu1 %2372, %v1177_v52  }
 0x491   : > { %2237 = vmatpush3.bf16.msra.mxu0 %v2234_v50 }
 0x492   : > { %2249 = vmatprep.subr.bf16.mxu0 %v2248_v1 }
 0x493   : > { %1243 = vperm.xlu0 %2373, %v1180_v53   ;;  %1238 = vperm.xlu1 %2372, %v1179_v54  }
 0x494   : > { %2099 = vmatmul.mubr.msk.f32.vlgmr.msra.gmra.mrb[4].mxu0 %vm944_vm10, %v580_v55 }
 0x495   : > { %2101 = vmatprep.mubr.msk.f32.mxu0 %vm944_vm10, %v581_v56  ;;  %2251 = vmatpush3.bf16.msra.mxu0 %v2248_v1 }
 0x496   : > { %2253 = vmatprep.subr.bf16.mxu0 %v2252_v3 }
 0x497   : > { %v932_v58 = vpop.permute.xlu0 %931 }
 0x498   : > { %2102 = vmatmul.mubr.msk.f32.gmra.mrb[6].mxu0 %vm944_vm10, %v582_v57  ;;  %v927_v59 = vpop.permute.xlu1 %926 }
 0x499   : > { %2255 = vmatpush3.bf16.msra.mxu0 %v2252_v3 }
 0x49a   : > { %2257 = vmatprep.subr.bf16.mxu0 %v2256_v26 }
 0x49b   : > { %v942_v60 = vpop.permute.xlu0 %941 }
 0x49c   : > { %v937_v61 = vpop.permute.xlu1 %936 }
 0x49d   : > { %2259 = vmatpush3.bf16.msra.mxu0 %v2256_v26  ;;  %v1185_v26 = vld [vmem:[%s3193_s30] sm:$0xff] }
 0x49e   : > { %2261 = vmatprep.subr.bf16.mxu0 %v2260_v29 }
 0x4a1   : > { %2263 = vmatpush3.bf16.msra.mxu0 %v2260_v29  ;;  %v1186_v29 = vld [vmem:[%s3193_s30 + $0x8] sm:$0xff] }
 0x4a2   : > { %2266 = vmatprep.subr.msk.bf16.mxu0 %vm2265_vm15, %v2264_v32 }
 0x4a5   : > { %2269 = vmatpush3.bf16.msk.msra.mxu0 %vm2265_vm15, %v2264_v32  ;;  %v1200_v32 = vld [vmem:[%s3194_s14 + $0x8] sm:$0xff] }
 0x4fd   : > { %v1218_v4 = vpop.permute.xlu1 %1217  ;;  %v1222_v5 = vpop.permute.xlu0 %1221 }
 0x4fe   : > { %v1224_v6 = vsel %vm619_vm3, %v1214_v45, %v1218_v4  ;;  %vm3056_vm3 = vmpackc.low %vm1491_vm2, %vm1491_vm2 }
 0x4ff   : > { %v1225_v7 = vsel %vm621_vm4, %v1224_v6, %v1222_v5  ;;  %vm1658_vm4 = vcmask 1045504  }
 0x500   : > { %2118 = vmatprep.subr.msk.mxu1 %vm656_vm5, %v1225_v7 }
 0x50e   : > { %v1234_v37 = vpop.permute.xlu0 %1233  ;;  %v1229_v38 = vpop.permute.xlu1 %1228 }
 0x512   : > { %v1244_v43 = vpop.permute.xlu0 %1243  ;;  %v1239_v46 = vpop.permute.xlu1 %1238 }
 0x567   : > { %v2100_v8 = vpop.f32.mrb[4].mxu0 }
 0x568   : > { %v1029_v9 = vadd.f32 %v2100_v8, %v932_v58  ;;  %v1023_v10 = vpop.f32.mrb[5].mxu0 }
 0x569   : > { %v1024_v11 = vadd.f32 %v1023_v10, %v927_v59 }
 0x56a   : > { %v1043_v14 = vmax.f32 %v1029_v9, 0.0 }
 0x56b   : > { %v1042_v12 = vmax.f32 %v1024_v11, 0.0  ;;  %v2103_v13 = vpop.f32.mrb[6].mxu0 }
 0x56c   : > { %v1039_v15 = vadd.f32 %v2103_v13, %v942_v60  ;;  %v1033_v16 = vpop.f32.mrb[7].mxu0 }
 0x56d   : > { %v1034_v17 = vadd.f32 %v1033_v16, %v937_v61  ;;  %2112 = vmatprep.mubr.msk.f32.mxu1 %vm1046_vm14, %v1042_v12 }
 0x56e   : > { %2113 = vmatmul.mubr.msk.f32.vlgmr.msra.gmra.mrb[4].mxu1 %vm1046_vm14, %v1043_v14  ;;  %v1045_v19 = vmax.f32 %v1039_v15, 0.0 }
 0x56f   : > { %v1044_v18 = vmax.f32 %v1034_v17, 0.0  ;;  %2119 = vmatpush3.msk.msra.mxu1 %vm656_vm5, %v1225_v7  ;;  %vm1645_vm5 = vcmask 310272  }
 0x571   : > { %2115 = vmatprep.mubr.msk.f32.mxu1 %vm1046_vm14, %v1044_v18 }
 0x572   : > { %2116 = vmatmul.mubr.msk.f32.gmra.mrb[6].mxu1 %vm1046_vm14, %v1045_v19 }
 0x573   : > { %2120 = vmatprep.mubr.msk.f32.mxu1 %vm643_vm0, %v1173_v20 }
 0x576   : > { %2121 = vmatmul.mubr.msk.f32.vlgmr.msra.gmra.mrb[8].mxu1 %vm643_vm0, %v1174_v21 }
 0x577   : > { %2123 = vmatprep.mubr.msk.f32.mxu1 %vm643_vm0, %v1175_v22 }
 0x57a   : > { %2124 = vmatmul.mubr.msk.f32.gmra.mrb[10].mxu1 %vm643_vm0, %v1176_v23  ;;  %vm1350_vm0 = vcmask 621568  }
 0x57b   : > { %2176 = vmatprep.mubr.msk.f32.mxu1 %vm944_vm10, %v1181_v27 }
 0x641   : > { %v3042_v33 = vpop.f32.mrb[4].mxu1 }
 0x642   : > { %v3044_v34 = vpop.f32.mrb[5].mxu1 }
 0x645   : > { %v3046_v35 = vpop.f32.mrb[6].mxu1 }
 0x646   : > { %v3048_v36 = vpop.f32.mrb[7].mxu1 }
 0x649   : > { %v2122_v39 = vpop.f32.mrb[8].mxu1 }
 0x64a   : > { %v1333_v40 = vadd.f32 %v2122_v39, %v1234_v37  ;;  %v1327_v41 = vpop.f32.mrb[9].mxu1  ;;  %v2298_v37 = vpack.c.bf16 %v1200_v32, %v1199_v31 }
 0x64b   : > { %v1328_v42 = vadd.f32 %v1327_v41, %v1229_v38 }
 0x64c   : > { %v1347_v47 = vmax.f32 %v1333_v40, 0.0  ;;  %2299 = vmatprep.subr.bf16.mxu0 %v2298_v37 }
 0x64d   : > { %v1346_v44 = vmax.f32 %v1328_v42, 0.0  ;;  %v2125_v45 = vpop.f32.mrb[10].mxu1 }
 0x64e   : > { %v1343_v48 = vadd.f32 %v2125_v45, %v1244_v43  ;;  %v1337_v49 = vpop.f32.mrb[11].mxu1 }
 0x64f   : > { %v1338_v50 = vadd.f32 %v1337_v49, %v1239_v46  ;;  %2146 = vmatprep.mubr.msk.f32.mxu0 %vm1350_vm0, %v1346_v44 }
 0x650   : > { %2147 = vmatmul.mubr.msk.f32.vlgmr.msra.gmra.mrb[8].mxu0 %vm1350_vm0, %v1347_v47  ;;  %v1349_v52 = vmax.f32 %v1343_v48, 0.0 }
 0x651   : > { %v1348_v51 = vmax.f32 %v1338_v50, 0.0  ;;  %2301 = vmatpush3.bf16.msra.mxu0 %v2298_v37 }
 0x653   : > { %2149 = vmatprep.mubr.msk.f32.mxu0 %vm1350_vm0, %v1348_v51 }
 0x654   : > { %2150 = vmatmul.mubr.msk.f32.gmra.mrb[10].mxu0 %vm1350_vm0, %v1349_v52 }
 0x723   : > { %v2148_v53 = vpop.f32.mrb[8].mxu0 }
 0x724   : > { %v1432_v54 = vpop.f32.mrb[9].mxu0 }
 0x725   : > { %v2414_v55 = vpack.i.bf16 %v2148_v53, %v1432_v54 }
 0x727   : > { %2415 = vrot.lane.b32.xlu1 %v2414_v55, %s2597_s27  ;;  %v2151_v56 = vpop.f32.mrb[10].mxu0  ;;  %v1183_v55 = vld [vmem:[#allocation6 + $0x10] sm:$0xff] }
 0x728   : > { %v1442_v57 = vpop.f32.mrb[11].mxu0 }
 0x729   : > { %v2419_v58 = vpack.i.bf16 %v2151_v56, %v1442_v57 }
 0x72b   : > { %2420 = vrot.lane.b32.xlu0 %v2419_v58, %s2597_s27 }
 0x799   : > { %v2416_v59 = vpop.permute.xlu1 %2415 }
 0x79a   : > { %v2418_v60 = vunpack.i.h.bf16 %v2416_v59  ;;  %v2417_v61 = vunpack.i.l.bf16 %v2416_v59 }
 0x79c   : > { %v1468_v62 = vmax.f32 %v2148_v53, %v2418_v60  ;;  %v1467_v63 = vmax.f32 %v1432_v54, %v2417_v61  ;;  %v1182_v54 = vld [vmem:[#allocation6 + $0x8] sm:$0xff] }
 0x79d   : > { %v2421_v0 = vpop.permute.xlu0 %2420 }
 0x79e   : > { %v2423_v1 = vunpack.i.h.bf16 %v2421_v0  ;;  %v2422_v2 = vunpack.i.l.bf16 %v2421_v0  ;;  %v2424_v3 = vpack.i.bf16 %v1468_v62, %v1467_v63 }
 0x7a0   : > { %v1470_v4 = vmax.f32 %v2151_v56, %v2423_v1  ;;  %v1469_v5 = vmax.f32 %v1442_v57, %v2422_v2  ;;  %2425 = vrot.lane.b32.xlu1 %v2424_v3, %s2591_s8  ;;  %v1184_v57 = vld [vmem:[#allocation6 + $0x18] sm:$0xff] }
 0x7a2   : > { %v2429_v6 = vpack.i.bf16 %v1470_v4, %v1469_v5  ;;  %v1201_v5 = vld [vmem:[%s3194_s14 + $0x10] sm:$0xff] }
 0x7a4   : > { %2430 = vrot.lane.b32.xlu0 %v2429_v6, %s2591_s8  ;;  %s3195_s8 = sld [smem:[#allocation17_spill]] }
 0x7aa   : > { %s564_s18 = scalar_lea.vmem %s3195_s8, %s1960_s15 }
 0x812   : > { %v2426_v7 = vpop.permute.xlu1 %2425 }
 0x813   : > { %v2428_v8 = vunpack.i.h.bf16 %v2426_v7  ;;  %v2427_v9 = vunpack.i.l.bf16 %v2426_v7 }
 0x815   : > { %v1488_v10 = vsel %vm606_vm1, 0.0, %v2428_v8  ;;  %v1487_v11 = vsel %vm606_vm1, 0.0, %v2427_v9 }
 0x816   : > { %v1493_v13 = vsel %vm1491_vm2, %v1488_v10, 0.0  ;;  %v1492_v14 = vsel %vm1491_vm2, %v1487_v11, 0.0  ;;  %v2270_v15 = vpack.c.bf16 %v1488_v10, %v1487_v11  ;;  %v2431_v16 = vpop.permute.xlu0 %2430 }
 0x817   : > { %v2433_v17 = vunpack.i.h.bf16 %v2431_v16  ;;  %v2432_v18 = vunpack.i.l.bf16 %v2431_v16  ;;  %v2434_v19 = vpack.i.bf16 %v1493_v13, %v1492_v14 }
 0x818   : > { %2272 = vmatprep.subr.msk.bf16.mxu1 %vm3056_vm3, %v2270_v15 }
 0x819   : > { %v1490_v20 = vsel %vm606_vm1, 0.0, %v2433_v17  ;;  %v1489_v21 = vsel %vm606_vm1, 0.0, %v2432_v18  ;;  %2275 = vmatpush3.bf16.msk.msra.mxu1 %vm3056_vm3, %v2270_v15  ;;  %2435 = vrot.lane.b32.xlu1 %v2434_v19, %s2594_s29  ;;  %vm1167_vm1 = vcmask 105472  }
 0x81a   : > { %v1495_v22 = vsel %vm1491_vm2, %v1490_v20, 0.0  ;;  %v1494_v23 = vsel %vm1491_vm2, %v1489_v21, 0.0  ;;  %v2276_v24 = vpack.c.bf16 %v1490_v20, %v1489_v21 }
 0x81b   : > { %v2439_v25 = vpack.i.bf16 %v1495_v22, %v1494_v23 }
 0x81c   : > { %2278 = vmatprep.subr.msk.bf16.mxu1 %vm3056_vm3, %v2276_v24 }
 0x81d   : > { %2445 = vrot.lane.b32.xlu1 %v2434_v19, %s2593_s23  ;;  %2281 = vmatpush3.bf16.msk.msra.mxu1 %vm3056_vm3, %v2276_v24 }
 0x81e   : > { %2440 = vrot.lane.b32.xlu0 %v2439_v25, %s2594_s29 }
 0x821   : > { %1526 = vperm.xlu1 %2372, %v1185_v26  }
 0x822   : > { %2450 = vrot.lane.b32.xlu0 %v2439_v25, %s2593_s23 }
 0x825   : > { %1536 = vperm.xlu1 %2372, %v1187_v28  }
 0x826   : > { %1531 = vperm.xlu0 %2373, %v1186_v29  }
 0x829   : > { %1151 = vrot.lane.b32.xlu1 %v3044_v34, %s2598_s0 }
 0x82a   : > { %1541 = vperm.xlu0 %2373, %v1188_v30  }
 0x82d   : > { %1155 = vrot.lane.b32.xlu1 %v3048_v36, %s2598_s0 }
 0x82e   : > { %1153 = vrot.lane.b32.xlu0 %v3042_v33, %s2598_s0 }
 0x832   : > { %1157 = vrot.lane.b32.xlu0 %v3046_v35, %s2598_s0  ;;  %s2599_s0 = smov 109  }
 0x88b   : > { %v2436_v38 = vpop.permute.xlu1 %2435 }
 0x88c   : > { %v2438_v39 = vunpack.i.h.bf16 %v2436_v38  ;;  %v2437_v40 = vunpack.i.l.bf16 %v2436_v38 }
 0x88e   : > { %v2282_v41 = vpack.c.bf16 %v2438_v39, %v2437_v40 }
 0x88f   : > { %v2446_v42 = vpop.permute.xlu1 %2445 }
 0x890   : > { %v2441_v43 = vpop.permute.xlu0 %2440  ;;  %2283 = vmatprep.subr.bf16.mxu1 %v2282_v41  ;;  %v2448_v44 = vunpack.i.h.bf16 %v2446_v42  ;;  %v2447_v45 = vunpack.i.l.bf16 %v2446_v42 }
 0x891   : > { %v2443_v46 = vunpack.i.h.bf16 %v2441_v43  ;;  %v2442_v47 = vunpack.i.l.bf16 %v2441_v43  ;;  %2285 = vmatpush3.bf16.msra.mxu1 %v2282_v41 }
 0x892   : > { %v2290_v50 = vpack.c.bf16 %v2448_v44, %v2447_v45 }
 0x893   : > { %v2286_v48 = vpack.c.bf16 %v2443_v46, %v2442_v47 }
 0x894   : > { %v2451_v49 = vpop.permute.xlu0 %2450 }
 0x895   : > { %v2453_v51 = vunpack.i.h.bf16 %v2451_v49  ;;  %v2452_v52 = vunpack.i.l.bf16 %v2451_v49  ;;  %2287 = vmatprep.subr.bf16.mxu1 %v2286_v48 }
 0x896   : > { %2289 = vmatpush3.bf16.msra.mxu1 %v2286_v48 }
 0x897   : > { %2291 = vmatprep.subr.bf16.mxu1 %v2290_v50  ;;  %v2294_v53 = vpack.c.bf16 %v2453_v51, %v2452_v52 }
 0x89a   : > { %2293 = vmatpush3.bf16.msra.mxu1 %v2290_v50 }
 0x89b   : > { %2295 = vmatprep.subr.bf16.mxu1 %v2294_v53 }
 0x89e   : > { %2297 = vmatpush3.bf16.msra.mxu1 %v2294_v53 }
 0x8a0   : > { %v1527_v56 = vpop.permute.xlu1 %1526 }
 0x8a1   : > { %2177 = vmatmul.mubr.msk.f32.vlgmr.msra.gmra.mrb[12].mxu1 %vm944_vm10, %v1182_v54 }
 0x8a2   : > { %2179 = vmatprep.mubr.msk.f32.mxu1 %vm944_vm10, %v1183_v55 }
 0x8a4   : > { %v1537_v58 = vpop.permute.xlu1 %1536 }
 0x8a5   : > { %v1532_v59 = vpop.permute.xlu0 %1531  ;;  %2180 = vmatmul.mubr.msk.f32.gmra.mrb[14].mxu1 %vm944_vm10, %v1184_v57 }
 0x8a8   : > { %v1152_v60 = vpop.permute.xlu1 %1151 }
 0x8a9   : > { %v1163_v61 = vmax.f32 %v3044_v34, %v1152_v60  ;;  %v1542_v62 = vpop.permute.xlu0 %1541  ;;  %v1202_v34 = vld [vmem:[%s3194_s14 + $0x18] sm:$0xff] }
 0x8aa   : > { %v2302_v6 = vpack.c.bf16 %v1202_v34, %v1201_v5 }
 0x8ab   : > { %1168 = vst.msk [vmem:[%s564_s18] sm:$0xff] %vm1167_vm1, %v1163_v61 }
 0x8ac   : > { %v1156_v63 = vpop.permute.xlu1 %1155  ;;  %2303 = vmatprep.subr.bf16.mxu0 %v2302_v6 }
 0x8ad   : > { %v1165_v0 = vmax.f32 %v3048_v36, %v1156_v63  ;;  %v1154_v1 = vpop.permute.xlu0 %1153  ;;  %2305 = vmatpush3.bf16.msra.mxu0 %v2302_v6 }
 0x8ae   : > { %v1164_v2 = vmax.f32 %v3042_v33, %v1154_v1  ;;  %v1203_v33 = vld [vmem:[%s3194_s14 + $0x20] sm:$0x3f] }
 0x8af   : > { %1170 = vst.msk [vmem:[%s564_s18 + $0x10] sm:$0xff] %vm1167_vm1, %v1165_v0  ;;  %2190 = vmatprep.subr.msk.mxu0 %vm1658_vm4, %v1203_v33 }
 0x8b0   : > { %1169 = vst.msk [vmem:[%s564_s18 + $0x8] sm:$0xff] %vm1167_vm1, %v1164_v2 }
 0x8b1   : > { %v1158_v3 = vpop.permute.xlu0 %1157  ;;  %2191 = vmatpush3.msk.msra.mxu0 %vm1658_vm4, %v1203_v33 }
 0x8b2   : > { %v1166_v4 = vmax.f32 %v3046_v35, %v1158_v3 }
 0x8b4   : > { %1171 = vst.msk [vmem:[%s564_s18 + $0x18] sm:$0xff] %vm1167_vm1, %v1166_v4 }
 0x974   : > { %v2178_v35 = vpop.f32.mrb[12].mxu1 }
 0x975   : > { %v1628_v36 = vadd.f32 %v2178_v35, %v1532_v59  ;;  %v1622_v7 = vpop.f32.mrb[13].mxu1 }
 0x976   : > { %v1623_v8 = vadd.f32 %v1622_v7, %v1527_v56 }
 0x977   : > { %v1642_v11 = vmax.f32 %v1628_v36, 0.0 }
 0x978   : > { %v1641_v9 = vmax.f32 %v1623_v8, 0.0  ;;  %v2181_v10 = vpop.f32.mrb[14].mxu1 }
 0x979   : > { %v1638_v12 = vadd.f32 %v2181_v10, %v1542_v62  ;;  %v1632_v13 = vpop.f32.mrb[15].mxu1 }
 0x97a   : > { %v1633_v14 = vadd.f32 %v1632_v13, %v1537_v58  ;;  %2192 = vmatprep.mubr.msk.f32.mxu0 %vm1645_vm5, %v1641_v9 }
 0x97b   : > { %2193 = vmatmul.mubr.msk.f32.vlgmr.msra.gmra.mrb[12].mxu0 %vm1645_vm5, %v1642_v11  ;;  %v1644_v16 = vmax.f32 %v1638_v12, 0.0 }
 0x97c   : > { %v1643_v15 = vmax.f32 %v1633_v14, 0.0 }
 0x97e   : > { %2195 = vmatprep.mubr.msk.f32.mxu0 %vm1645_vm5, %v1643_v15 }
 0x97f   : > { %2196 = vmatmul.mubr.msk.f32.gmra.mrb[14].mxu0 %vm1645_vm5, %v1644_v16 }
 0xa4e   : > { %v2194_v17 = vpop.f32.mrb[12].mxu0 }
 0xa4f   : > { %1753 = vrot.lane.b32.xlu0 %v2194_v17, %s2599_s0  ;;  %v1728_v18 = vpop.f32.mrb[13].mxu0 }
 0xa50   : > { %1751 = vrot.lane.b32.xlu1 %v1728_v18, %s2599_s0 }
 0xa52   : > { %v2197_v19 = vpop.f32.mrb[14].mxu0 }
 0xa53   : > { %1757 = vrot.lane.b32.xlu0 %v2197_v19, %s2599_s0  ;;  %v1738_v20 = vpop.f32.mrb[15].mxu0 }
 0xa54   : > { %1755 = vrot.lane.b32.xlu1 %v1738_v20, %s2599_s0 }
 0xac1   : > { %v1754_v21 = vpop.permute.xlu0 %1753 }
 0xac2   : > { %v1764_v22 = vmax.f32 %v2194_v17, %v1754_v21  ;;  %v1752_v23 = vpop.permute.xlu1 %1751 }
 0xac3   : > { %v1763_v24 = vmax.f32 %v1728_v18, %v1752_v23 }
 0xac4   : > { %1769 = vst.msk [vmem:[%s569_s26 + $0x8] sm:$0xff] %vm1767_vm6, %v1764_v22 }
 0xac5   : > { %1768 = vst.msk [vmem:[%s569_s26] sm:$0xff] %vm1767_vm6, %v1763_v24  ;;  %v1758_v25 = vpop.permute.xlu0 %1757 }
 0xac6   : > { %v1766_v26 = vmax.f32 %v2197_v19, %v1758_v25  ;;  %v1756_v27 = vpop.permute.xlu1 %1755 }
 0xac7   : > { %v1765_v28 = vmax.f32 %v1738_v20, %v1756_v27 }
 0xac8   : > { %1771 = vst.msk [vmem:[%s569_s26 + $0x18] sm:$0xff] %vm1767_vm6, %v1766_v26 }
 0xac9   : > { %1770 = vst.msk [vmem:[%s569_s26 + $0x10] sm:$0xff] %vm1767_vm6, %v1765_v28 }
 0xaca PF: > { %s3197_s21 = sld [smem:[#allocation10_spill]]  ;;  %s3198_s22 = sld [smem:[#allocation11_spill]] }
 0xacb   : > { %s3199_s18 = smov %s2576_s19  ;;  %s3200_s19 = smov %s2580_s20 }
 0xad0   : > { %p29_p9 = scmp.ge.s32.totalorder %s3197_s21, 4   ;;  %s3201_s20 = smov %s3198_s22 }
 0xad2   :  { %31 = sbr.rel (!%p29_p9) target bundleno = 13 (0xd), region = 145 }
 0xad9   :  { %1809 = vsyncpa [#allocation3], 1 }
 0xada   :  { %1811 = vsyncpa [#allocation3 + $0x1], 1 }
 0xadb   :  { %1812 = vsyncpa [#allocation5], 1 }
 0xadc   :  { %1814 = vsyncpa [#allocation5 + $0x1], 1 }

</bundles_post_ra>
